<compile_context>
chip_gen: v7x
topology: tpu7x:2x2x1
jax: 0.10.0
libtpu: 0.0.40
codegen_flags: <defaults>
</compile_context>

<pallas_src>
import functools
from typing import List, Optional, Sequence

import jax
import jax.numpy as jnp
from jax.experimental import pallas as pl
from jax.experimental.pallas import tpu as pltpu

LN_EPS = 1e-5


def _round_up(x: int, m: int) -> int:
    return ((x + m - 1) // m) * m


def _block_diag(w, g: int):
    """[K, C] -> block-diagonal [g*K, g*C] (g copies of w on the diagonal)."""
    if g == 1:
        return w
    k, c = w.shape
    out = jnp.zeros((g * k, g * c), w.dtype)
    for i in range(g):
        out = out.at[i * k:(i + 1) * k, i * c:(i + 1) * c].set(w)
    return out


def _make_kernel(n_branches: int, n_cat: int):
    """Kernel over lane-dense row-group tiles.

    Ref order:
      x_0..x_{n-1}        [TILE_R, G*in_ch_i]   row-group tiles
      cat_0..cat_{m-1}    [TILE_R, G*C]         row-group tiles (lane-dense)
      w1_0..w1_{n-1}      [G*in_ch_i, G*C]      block-diag, VMEM-resident
      w2_0..w2_{n-1}      [G*C, G*C]            block-diag, VMEM-resident
      aggr_w              [G*C, G*C]            block-diag, VMEM-resident
      bmat                [G*C, G*C]            block-diag averaging matrix
      vecs                [3n+6, G*C]           packed (1, G*C) param rows
      out                 [TILE_R, G*C]

    vecs rows: 3i..3i+2 = b1_i, ln_gamma_i, ln_beta_i per branch;
               3n = sum_i b2_i; 3n+1.. = aggr_ln_g, aggr_ln_b, aggr_bias,
               out_ln_g, out_ln_b.
    """

    def kernel(*refs):
        idx = 0
        xs = refs[idx: idx + n_branches]; idx += n_branches
        cats = refs[idx: idx + n_cat]; idx += n_cat
        w1s = refs[idx: idx + n_branches]; idx += n_branches
        w2s = refs[idx: idx + n_branches]; idx += n_branches
        aw = refs[idx]; idx += 1
        bmat = refs[idx]; idx += 1
        vecs = refs[idx]; idx += 1
        out_ref = refs[idx]

        v = vecs[...]        # [3n+6, G*C]
        Bm = bmat[...]       # [G*C, G*C] per-group averaging matrix (J_C / C)

        def layer_norm(x, gamma, beta):
            # Two-pass LN; per-group mean/var computed on the MXU and returned
            # already broadcast within each C-lane group by Bm.
            mu = jnp.dot(x, Bm, preferred_element_type=jnp.float32)
            d = x - mu
            var = jnp.dot(d * d, Bm, preferred_element_type=jnp.float32)
            return d * jax.lax.rsqrt(var + LN_EPS) * gamma + beta

        # Per-branch: Linear -> LN -> ReLU -> Linear, summed across branches.
        acc = None
        for i in range(n_branches):
            b1 = v[3 * i: 3 * i + 1, :]
            g1 = v[3 * i + 1: 3 * i + 2, :]
            be1 = v[3 * i + 2: 3 * i + 3, :]
            h = jnp.dot(xs[i][...], w1s[i][...],
                        preferred_element_type=jnp.float32) + b1
            h = layer_norm(h, g1, be1)
            h = jnp.maximum(h, 0.0)
            h = jnp.dot(h, w2s[i][...], preferred_element_type=jnp.float32)
            acc = h if acc is None else acc + h

        base = 3 * n_branches
        acc = acc + v[base: base + 1, :]          # sum_i b2_i
        for c in cats:                            # lane-dense categorical sum
            acc = acc + c[...]

        # Aggregate: LN -> ReLU -> Linear -> LN, all lane-dense.
        y = layer_norm(acc, v[base + 1: base + 2, :], v[base + 2: base + 3, :])
        y = jnp.maximum(y, 0.0)
        y = jnp.dot(y, aw[...], preferred_element_type=jnp.float32) \
            + v[base + 3: base + 4, :]
        y = layer_norm(y, v[base + 4: base + 5, :], v[base + 5: base + 6, :])
        out_ref[...] = y.astype(out_ref.dtype)    # unmasked 128-lane store

    return kernel


def init_params(key, in_channels: Sequence[int], out_channel: int):
    """Deterministic synthetic parameters (xavier-ish scaling)."""
    params = {"branches": [], "aggr": {}}
    for in_ch in in_channels:
        key, k1, k2 = jax.random.split(key, 3)
        params["branches"].append({
            "w1": jax.random.normal(k1, (in_ch, out_channel), jnp.float32)
                  * (2.0 / (in_ch + out_channel)) ** 0.5,
            "b1": jnp.zeros((1, out_channel), jnp.float32),
            "ln_g": jnp.ones((1, out_channel), jnp.float32),
            "ln_b": jnp.zeros((1, out_channel), jnp.float32),
            "w2": jax.random.normal(k2, (out_channel, out_channel), jnp.float32)
                  * (1.0 / out_channel) ** 0.5,
            "b2": jnp.zeros((1, out_channel), jnp.float32),
        })
    key, ka = jax.random.split(key)
    params["aggr"] = {
        "ln_g": jnp.ones((1, out_channel), jnp.float32),
        "ln_b": jnp.zeros((1, out_channel), jnp.float32),
        "w": jax.random.normal(ka, (out_channel, out_channel), jnp.float32)
             * (1.0 / out_channel) ** 0.5,
        "b": jnp.zeros((1, out_channel), jnp.float32),
        "out_ln_g": jnp.ones((1, out_channel), jnp.float32),
        "out_ln_b": jnp.zeros((1, out_channel), jnp.float32),
    }
    return params


def multiple_input_embedding(
    continuous_inputs: List[jax.Array],
    params,
    categorical_inputs: Optional[List[jax.Array]] = None,
    *,
    tile_rows: int = 2048,      # logical rows per tile (upper bound)
):
    n = len(continuous_inputs)
    N = continuous_inputs[0].shape[0]
    C = params["aggr"]["w"].shape[0]
    in_chs = [int(x.shape[1]) for x in continuous_inputs]
    cats = list(categorical_inputs) if categorical_inputs is not None else []
    m = len(cats)

    # Lane-density group size: fold G consecutive logical rows into one
    # 128-lane row (free row-major reshape). Fallback G=1 keeps plain layout.
    if C < 128 and 128 % C == 0 and N % (128 // C) == 0:
        G = 128 // C
    else:
        G = 1
    GC = G * C
    R = N // G                       # grouped rows

    # Grouped-row tile: multiple of 8 sublanes. For large inputs, cap so the
    # grid has >= 2 blocks (keeps both v7x TensorCores busy); floor of 128
    # grouped rows so small inputs stay single-block.
    target = max(8, _round_up(max(tile_rows // G, 1), 8))
    TILE_R = min(target, max(_round_up(pl.cdiv(R, 2), 8), 128))
    TILE_R = max(8, min(TILE_R, _round_up(R, 8)))
    grid = (pl.cdiv(R, TILE_R),)

    # ---- Free wrapper-side reshapes into the lane-dense layout. ----
    xs_d = [x.reshape(R, G * ic) for x, ic in zip(continuous_inputs, in_chs)]
    cats_d = [c.reshape(R, GC) for c in cats]

    # ---- Host-side parameter packing (tiny, once per trace). ----
    ap = params["aggr"]
    tile_vec = lambda r: jnp.tile(r, (1, G))                    # noqa: E731
    w1s = [_block_diag(bp["w1"], G) for bp in params["branches"]]
    w2s = [_block_diag(bp["w2"], G) for bp in params["branches"]]
    aw = _block_diag(ap["w"], G)
    bmat = _block_diag(jnp.full((C, C), 1.0 / C, jnp.float32), G)
    b2_sum = functools.reduce(lambda a, b: a + b,
                              [bp["b2"] for bp in params["branches"]])
    vec_rows = []
    for bp in params["branches"]:
        vec_rows += [tile_vec(bp["b1"]), tile_vec(bp["ln_g"]), tile_vec(bp["ln_b"])]
    vec_rows += [tile_vec(b2_sum), tile_vec(ap["ln_g"]), tile_vec(ap["ln_b"]),
                 tile_vec(ap["b"]), tile_vec(ap["out_ln_g"]), tile_vec(ap["out_ln_b"])]
    vecs = jnp.concatenate(vec_rows, axis=0)        # [3n+6, G*C]

    flat_args = xs_d + cats_d + w1s + w2s + [aw, bmat, vecs]

    # ---- BlockSpecs ----
    tiled = lambda i: (i, 0)          # noqa: E731
    resident = lambda i: (0, 0)       # noqa: E731
    in_specs = []
    for ic in in_chs:
        in_specs.append(pl.BlockSpec((TILE_R, G * ic), tiled))
    for _ in range(m):
        in_specs.append(pl.BlockSpec((TILE_R, GC), tiled))
    for ic in in_chs:
        in_specs.append(pl.BlockSpec((G * ic, GC), resident))   # w1_i
    for _ in range(n):
        in_specs.append(pl.BlockSpec((GC, GC), resident))       # w2_i
    in_specs.append(pl.BlockSpec((GC, GC), resident))           # aggr_w
    in_specs.append(pl.BlockSpec((GC, GC), resident))           # bmat
    in_specs.append(pl.BlockSpec((3 * n + 6, GC), resident))    # packed vecs
    out_spec = pl.BlockSpec((TILE_R, GC), tiled)

    out = pl.pallas_call(
        _make_kernel(n, m),
        out_shape=jax.ShapeDtypeStruct((R, GC), jnp.float32),
        grid=grid,
        in_specs=in_specs,
        out_specs=out_spec,
        compiler_params=pltpu.CompilerParams(
            dimension_semantics=("parallel",),      # shards rows across v7x TCs
            vmem_limit_bytes=48 * 1024 * 1024,      # safe on v7x's 64 MiB VMEM
        ),
    )(*flat_args)
    return out.reshape(N, C)
    # TODO(synk): bf16 inputs/weights (upcast before LayerNorm) would halve the
    # HBM read stream on v5e but changes precision; left out pending validation.


# ---------------------------- reference & test ----------------------------

def _ln_ref(x, g, b):
    mu = jnp.mean(x, axis=-1, keepdims=True)
    var = jnp.mean((x - mu) ** 2, axis=-1, keepdims=True)
    return (x - mu) / jnp.sqrt(var + LN_EPS) * g + b


def _reference(continuous_inputs, params, categorical_inputs=None):
    outs = []
    for x, bp in zip(continuous_inputs, params["branches"]):
        h = x @ bp["w1"] + bp["b1"]
        h = _ln_ref(h, bp["ln_g"], bp["ln_b"])
        h = jnp.maximum(h, 0.0)
        h = h @ bp["w2"] + bp["b2"]
        outs.append(h)
    out = functools.reduce(lambda a, b: a + b, outs)
    if categorical_inputs is not None:
        out = out + functools.reduce(lambda a, b: a + b, categorical_inputs)
    ap = params["aggr"]
    y = _ln_ref(out, ap["ln_g"], ap["ln_b"])
    y = jnp.maximum(y, 0.0)
    y = y @ ap["w"] + ap["b"]
    return _ln_ref(y, ap["out_ln_g"], ap["out_ln_b"])


if __name__ == "__main__":
    key = jax.random.PRNGKey(0)
    in_channels = [8, 16]
    out_channel = 32
    N = 64  # number of nodes/tokens (small test shape)

    key, kx0, kx1, kc0, kc1, kp = jax.random.split(key, 6)
    x0 = jax.random.normal(kx0, (N, in_channels[0]), jnp.float32)
    x1 = jax.random.normal(kx1, (N, in_channels[1]), jnp.float32)
    cat0 = jax.random.normal(kc0, (N, out_channel), jnp.float32)
    cat1 = jax.random.normal(kc1, (N, out_channel), jnp.float32)

    params = init_params(kp, in_channels, out_channel)

    # With categorical inputs.
    out = multiple_input_embedding([x0, x1], params, [cat0, cat1])
    out = jax.block_until_ready(out)
    ref = _reference([x0, x1], params, [cat0, cat1])
    assert out.shape == (N, out_channel)
    assert jnp.allclose(out, ref, atol=1e-4, rtol=1e-4), "mismatch (with cat)"

    # Without categorical inputs (separate kernel variant, no zeros array).
    out2 = multiple_input_embedding([x0, x1], params, None)
    out2 = jax.block_until_ready(out2)
    ref2 = _reference([x0, x1], params, None)
    assert jnp.allclose(out2, ref2, atol=1e-4, rtol=1e-4), "mismatch (no cat)"

    print("KERNEL_OK")
</pallas_src>

<mosaic_0001>
module attributes {stable_mosaic.version = 11 : i64} {
  func.func @kernel(%arg0: i32, %arg1: memref<16x32xf32, #tpu.memory_space<vmem>>, %arg2: memref<16x64xf32, #tpu.memory_space<vmem>>, %arg3: memref<16x128xf32, #tpu.memory_space<vmem>>, %arg4: memref<16x128xf32, #tpu.memory_space<vmem>>, %arg5: memref<32x128xf32, #tpu.memory_space<vmem>>, %arg6: memref<64x128xf32, #tpu.memory_space<vmem>>, %arg7: memref<128x128xf32, #tpu.memory_space<vmem>>, %arg8: memref<128x128xf32, #tpu.memory_space<vmem>>, %arg9: memref<128x128xf32, #tpu.memory_space<vmem>>, %arg10: memref<128x128xf32, #tpu.memory_space<vmem>>, %arg11: memref<12x128xf32, #tpu.memory_space<vmem>>, %arg12: memref<16x128xf32, #tpu.memory_space<vmem>>) attributes {dimension_semantics = [#tpu.dimension_semantics<parallel>], iteration_bounds = array<i64: 1>, scalar_prefetch = 0 : i64, scratch_operands = 0 : i64, tpu.core_type = #tpu.core_type<tc>, window_params = [{transform_indices = @transform_0, window_bounds = array<i64: 16, 32>}, {transform_indices = @transform_1, window_bounds = array<i64: 16, 64>}, {transform_indices = @transform_2, window_bounds = array<i64: 16, 128>}, {transform_indices = @transform_3, window_bounds = array<i64: 16, 128>}, {pipeline_mode = #tpu.pipeline_mode<synchronous>, transform_indices = @transform_4, window_bounds = array<i64: 32, 128>}, {pipeline_mode = #tpu.pipeline_mode<synchronous>, transform_indices = @transform_5, window_bounds = array<i64: 64, 128>}, {pipeline_mode = #tpu.pipeline_mode<synchronous>, transform_indices = @transform_6, window_bounds = array<i64: 128, 128>}, {pipeline_mode = #tpu.pipeline_mode<synchronous>, transform_indices = @transform_7, window_bounds = array<i64: 128, 128>}, {pipeline_mode = #tpu.pipeline_mode<synchronous>, transform_indices = @transform_8, window_bounds = array<i64: 128, 128>}, {pipeline_mode = #tpu.pipeline_mode<synchronous>, transform_indices = @transform_9, window_bounds = array<i64: 128, 128>}, {pipeline_mode = #tpu.pipeline_mode<synchronous>, transform_indices = @transform_10, window_bounds = array<i64: 12, 128>}, {transform_indices = @transform_11, window_bounds = array<i64: 16, 128>}]} {
    %c0 = arith.constant 0 : index
    %c0_0 = arith.constant 0 : index
    %0 = vector.load %arg11[%c0, %c0_0] : memref<12x128xf32, #tpu.memory_space<vmem>>, vector<12x128xf32>
    %c0_1 = arith.constant 0 : index
    %c0_2 = arith.constant 0 : index
    %1 = vector.load %arg10[%c0_1, %c0_2] : memref<128x128xf32, #tpu.memory_space<vmem>>, vector<128x128xf32>
    %2 = vector.extract_strided_slice %0 {offsets = [0, 0], sizes = [1, 128], strides = [1, 1]} : vector<12x128xf32> to vector<1x128xf32>
    %3 = vector.extract_strided_slice %0 {offsets = [1, 0], sizes = [1, 128], strides = [1, 1]} : vector<12x128xf32> to vector<1x128xf32>
    %4 = vector.extract_strided_slice %0 {offsets = [2, 0], sizes = [1, 128], strides = [1, 1]} : vector<12x128xf32> to vector<1x128xf32>
    %c0_3 = arith.constant 0 : index
    %c0_4 = arith.constant 0 : index
    %5 = vector.load %arg1[%c0_3, %c0_4] : memref<16x32xf32, #tpu.memory_space<vmem>>, vector<16x32xf32>
    %c0_5 = arith.constant 0 : index
    %c0_6 = arith.constant 0 : index
    %6 = vector.load %arg5[%c0_5, %c0_6] : memref<32x128xf32, #tpu.memory_space<vmem>>, vector<32x128xf32>
    %cst = arith.constant dense<0.000000e+00> : vector<16x128xf32>
    %7 = tpu.matmul %5, %6, %cst {dimension_numbers = #tpu.dot_dimension_numbers<[1], [0], [0], [1], [0, 0, 1, 1], [], []>} : vector<16x32xf32>, vector<32x128xf32>, vector<16x128xf32> -> vector<16x128xf32>
    %8 = vector.broadcast %2 : vector<1x128xf32> to vector<16x128xf32>
    %9 = arith.addf %7, %8 : vector<16x128xf32>
    %cst_7 = arith.constant dense<0.000000e+00> : vector<16x128xf32>
    %10 = tpu.matmul %9, %1, %cst_7 {dimension_numbers = #tpu.dot_dimension_numbers<[1], [0], [0], [1], [0, 0, 1, 1], [], []>} : vector<16x128xf32>, vector<128x128xf32>, vector<16x128xf32> -> vector<16x128xf32>
    %11 = arith.subf %9, %10 : vector<16x128xf32>
    %12 = arith.mulf %11, %11 : vector<16x128xf32>
    %cst_8 = arith.constant dense<0.000000e+00> : vector<16x128xf32>
    %13 = tpu.matmul %12, %1, %cst_8 {dimension_numbers = #tpu.dot_dimension_numbers<[1], [0], [0], [1], [0, 0, 1, 1], [], []>} : vector<16x128xf32>, vector<128x128xf32>, vector<16x128xf32> -> vector<16x128xf32>
    %cst_9 = arith.constant 9.99999974E-6 : f32
    %14 = vector.broadcast %cst_9 : f32 to vector<16x128xf32>
    %15 = arith.addf %13, %14 : vector<16x128xf32>
    %16 = math.rsqrt %15 : vector<16x128xf32>
    %17 = arith.mulf %11, %16 : vector<16x128xf32>
    %18 = vector.broadcast %3 : vector<1x128xf32> to vector<16x128xf32>
    %19 = arith.mulf %17, %18 : vector<16x128xf32>
    %20 = vector.broadcast %4 : vector<1x128xf32> to vector<16x128xf32>
    %21 = arith.addf %19, %20 : vector<16x128xf32>
    %cst_10 = arith.constant 0.000000e+00 : f32
    %22 = vector.broadcast %cst_10 : f32 to vector<16x128xf32>
    %23 = arith.maximumf %21, %22 : vector<16x128xf32>
    %c0_11 = arith.constant 0 : index
    %c0_12 = arith.constant 0 : index
    %24 = vector.load %arg7[%c0_11, %c0_12] : memref<128x128xf32, #tpu.memory_space<vmem>>, vector<128x128xf32>
    %cst_13 = arith.constant dense<0.000000e+00> : vector<16x128xf32>
    %25 = tpu.matmul %23, %24, %cst_13 {dimension_numbers = #tpu.dot_dimension_numbers<[1], [0], [0], [1], [0, 0, 1, 1], [], []>} : vector<16x128xf32>, vector<128x128xf32>, vector<16x128xf32> -> vector<16x128xf32>
    %26 = vector.extract_strided_slice %0 {offsets = [3, 0], sizes = [1, 128], strides = [1, 1]} : vector<12x128xf32> to vector<1x128xf32>
    %27 = vector.extract_strided_slice %0 {offsets = [4, 0], sizes = [1, 128], strides = [1, 1]} : vector<12x128xf32> to vector<1x128xf32>
    %28 = vector.extract_strided_slice %0 {offsets = [5, 0], sizes = [1, 128], strides = [1, 1]} : vector<12x128xf32> to vector<1x128xf32>
    %c0_14 = arith.constant 0 : index
    %c0_15 = arith.constant 0 : index
    %29 = vector.load %arg2[%c0_14, %c0_15] : memref<16x64xf32, #tpu.memory_space<vmem>>, vector<16x64xf32>
    %c0_16 = arith.constant 0 : index
    %c0_17 = arith.constant 0 : index
    %30 = vector.load %arg6[%c0_16, %c0_17] : memref<64x128xf32, #tpu.memory_space<vmem>>, vector<64x128xf32>
    %cst_18 = arith.constant dense<0.000000e+00> : vector<16x128xf32>
    %31 = tpu.matmul %29, %30, %cst_18 {dimension_numbers = #tpu.dot_dimension_numbers<[1], [0], [0], [1], [0, 0, 1, 1], [], []>} : vector<16x64xf32>, vector<64x128xf32>, vector<16x128xf32> -> vector<16x128xf32>
    %32 = vector.broadcast %26 : vector<1x128xf32> to vector<16x128xf32>
    %33 = arith.addf %31, %32 : vector<16x128xf32>
    %cst_19 = arith.constant dense<0.000000e+00> : vector<16x128xf32>
    %34 = tpu.matmul %33, %1, %cst_19 {dimension_numbers = #tpu.dot_dimension_numbers<[1], [0], [0], [1], [0, 0, 1, 1], [], []>} : vector<16x128xf32>, vector<128x128xf32>, vector<16x128xf32> -> vector<16x128xf32>
    %35 = arith.subf %33, %34 : vector<16x128xf32>
    %36 = arith.mulf %35, %35 : vector<16x128xf32>
    %cst_20 = arith.constant dense<0.000000e+00> : vector<16x128xf32>
    %37 = tpu.matmul %36, %1, %cst_20 {dimension_numbers = #tpu.dot_dimension_numbers<[1], [0], [0], [1], [0, 0, 1, 1], [], []>} : vector<16x128xf32>, vector<128x128xf32>, vector<16x128xf32> -> vector<16x128xf32>
    %cst_21 = arith.constant 9.99999974E-6 : f32
    %38 = vector.broadcast %cst_21 : f32 to vector<16x128xf32>
    %39 = arith.addf %37, %38 : vector<16x128xf32>
    %40 = math.rsqrt %39 : vector<16x128xf32>
    %41 = arith.mulf %35, %40 : vector<16x128xf32>
    %42 = vector.broadcast %27 : vector<1x128xf32> to vector<16x128xf32>
    %43 = arith.mulf %41, %42 : vector<16x128xf32>
    %44 = vector.broadcast %28 : vector<1x128xf32> to vector<16x128xf32>
    %45 = arith.addf %43, %44 : vector<16x128xf32>
    %cst_22 = arith.constant 0.000000e+00 : f32
    %46 = vector.broadcast %cst_22 : f32 to vector<16x128xf32>
    %47 = arith.maximumf %45, %46 : vector<16x128xf32>
    %c0_23 = arith.constant 0 : index
    %c0_24 = arith.constant 0 : index
    %48 = vector.load %arg8[%c0_23, %c0_24] : memref<128x128xf32, #tpu.memory_space<vmem>>, vector<128x128xf32>
    %cst_25 = arith.constant dense<0.000000e+00> : vector<16x128xf32>
    %49 = tpu.matmul %47, %48, %cst_25 {dimension_numbers = #tpu.dot_dimension_numbers<[1], [0], [0], [1], [0, 0, 1, 1], [], []>} : vector<16x128xf32>, vector<128x128xf32>, vector<16x128xf32> -> vector<16x128xf32>
    %50 = arith.addf %25, %49 : vector<16x128xf32>
    %51 = vector.extract_strided_slice %0 {offsets = [6, 0], sizes = [1, 128], strides = [1, 1]} : vector<12x128xf32> to vector<1x128xf32>
    %52 = vector.broadcast %51 : vector<1x128xf32> to vector<16x128xf32>
    %53 = arith.addf %50, %52 : vector<16x128xf32>
    %c0_26 = arith.constant 0 : index
    %c0_27 = arith.constant 0 : index
    %54 = vector.load %arg3[%c0_26, %c0_27] : memref<16x128xf32, #tpu.memory_space<vmem>>, vector<16x128xf32>
    %55 = arith.addf %53, %54 : vector<16x128xf32>
    %c0_28 = arith.constant 0 : index
    %c0_29 = arith.constant 0 : index
    %56 = vector.load %arg4[%c0_28, %c0_29] : memref<16x128xf32, #tpu.memory_space<vmem>>, vector<16x128xf32>
    %57 = arith.addf %55, %56 : vector<16x128xf32>
    %58 = vector.extract_strided_slice %0 {offsets = [7, 0], sizes = [1, 128], strides = [1, 1]} : vector<12x128xf32> to vector<1x128xf32>
    %59 = vector.extract_strided_slice %0 {offsets = [8, 0], sizes = [1, 128], strides = [1, 1]} : vector<12x128xf32> to vector<1x128xf32>
    %cst_30 = arith.constant dense<0.000000e+00> : vector<16x128xf32>
    %60 = tpu.matmul %57, %1, %cst_30 {dimension_numbers = #tpu.dot_dimension_numbers<[1], [0], [0], [1], [0, 0, 1, 1], [], []>} : vector<16x128xf32>, vector<128x128xf32>, vector<16x128xf32> -> vector<16x128xf32>
    %61 = arith.subf %57, %60 : vector<16x128xf32>
    %62 = arith.mulf %61, %61 : vector<16x128xf32>
    %cst_31 = arith.constant dense<0.000000e+00> : vector<16x128xf32>
    %63 = tpu.matmul %62, %1, %cst_31 {dimension_numbers = #tpu.dot_dimension_numbers<[1], [0], [0], [1], [0, 0, 1, 1], [], []>} : vector<16x128xf32>, vector<128x128xf32>, vector<16x128xf32> -> vector<16x128xf32>
    %cst_32 = arith.constant 9.99999974E-6 : f32
    %64 = vector.broadcast %cst_32 : f32 to vector<16x128xf32>
    %65 = arith.addf %63, %64 : vector<16x128xf32>
    %66 = math.rsqrt %65 : vector<16x128xf32>
    %67 = arith.mulf %61, %66 : vector<16x128xf32>
    %68 = vector.broadcast %58 : vector<1x128xf32> to vector<16x128xf32>
    %69 = arith.mulf %67, %68 : vector<16x128xf32>
    %70 = vector.broadcast %59 : vector<1x128xf32> to vector<16x128xf32>
    %71 = arith.addf %69, %70 : vector<16x128xf32>
    %cst_33 = arith.constant 0.000000e+00 : f32
    %72 = vector.broadcast %cst_33 : f32 to vector<16x128xf32>
    %73 = arith.maximumf %71, %72 : vector<16x128xf32>
    %c0_34 = arith.constant 0 : index
    %c0_35 = arith.constant 0 : index
    %74 = vector.load %arg9[%c0_34, %c0_35] : memref<128x128xf32, #tpu.memory_space<vmem>>, vector<128x128xf32>
    %cst_36 = arith.constant dense<0.000000e+00> : vector<16x128xf32>
    %75 = tpu.matmul %73, %74, %cst_36 {dimension_numbers = #tpu.dot_dimension_numbers<[1], [0], [0], [1], [0, 0, 1, 1], [], []>} : vector<16x128xf32>, vector<128x128xf32>, vector<16x128xf32> -> vector<16x128xf32>
    %76 = vector.extract_strided_slice %0 {offsets = [9, 0], sizes = [1, 128], strides = [1, 1]} : vector<12x128xf32> to vector<1x128xf32>
    %77 = vector.broadcast %76 : vector<1x128xf32> to vector<16x128xf32>
    %78 = arith.addf %75, %77 : vector<16x128xf32>
    %79 = vector.extract_strided_slice %0 {offsets = [10, 0], sizes = [1, 128], strides = [1, 1]} : vector<12x128xf32> to vector<1x128xf32>
    %80 = vector.extract_strided_slice %0 {offsets = [11, 0], sizes = [1, 128], strides = [1, 1]} : vector<12x128xf32> to vector<1x128xf32>
    %cst_37 = arith.constant dense<0.000000e+00> : vector<16x128xf32>
    %81 = tpu.matmul %78, %1, %cst_37 {dimension_numbers = #tpu.dot_dimension_numbers<[1], [0], [0], [1], [0, 0, 1, 1], [], []>} : vector<16x128xf32>, vector<128x128xf32>, vector<16x128xf32> -> vector<16x128xf32>
    %82 = arith.subf %78, %81 : vector<16x128xf32>
    %83 = arith.mulf %82, %82 : vector<16x128xf32>
    %cst_38 = arith.constant dense<0.000000e+00> : vector<16x128xf32>
    %84 = tpu.matmul %83, %1, %cst_38 {dimension_numbers = #tpu.dot_dimension_numbers<[1], [0], [0], [1], [0, 0, 1, 1], [], []>} : vector<16x128xf32>, vector<128x128xf32>, vector<16x128xf32> -> vector<16x128xf32>
    %cst_39 = arith.constant 9.99999974E-6 : f32
    %85 = vector.broadcast %cst_39 : f32 to vector<16x128xf32>
    %86 = arith.addf %84, %85 : vector<16x128xf32>
    %87 = math.rsqrt %86 : vector<16x128xf32>
    %88 = arith.mulf %82, %87 : vector<16x128xf32>
    %89 = vector.broadcast %79 : vector<1x128xf32> to vector<16x128xf32>
    %90 = arith.mulf %88, %89 : vector<16x128xf32>
    %91 = vector.broadcast %80 : vector<1x128xf32> to vector<16x128xf32>
    %92 = arith.addf %90, %91 : vector<16x128xf32>
    %c0_40 = arith.constant 0 : index
    %c0_41 = arith.constant 0 : index
    %93 = vector.load %arg12[%c0_40, %c0_41] : memref<16x128xf32, #tpu.memory_space<vmem>>, vector<16x128xf32>
    tpu.vector_store %arg12[%c0_40, %c0_41], %92 {strides = array<i32>} : memref<16x128xf32, #tpu.memory_space<vmem>>, vector<16x128xf32>,
    return
  }
  func.func @transform_0(%arg0: i32) -> (i32, i32) {
    %c0_i32 = arith.constant 0 : i32
    %c0_i32_0 = arith.constant 0 : i32
    return %arg0, %c0_i32 : i32, i32
  }
  func.func @transform_1(%arg0: i32) -> (i32, i32) {
    %c0_i32 = arith.constant 0 : i32
    %c0_i32_0 = arith.constant 0 : i32
    return %arg0, %c0_i32 : i32, i32
  }
  func.func @transform_2(%arg0: i32) -> (i32, i32) {
    %c0_i32 = arith.constant 0 : i32
    %c0_i32_0 = arith.constant 0 : i32
    return %arg0, %c0_i32 : i32, i32
  }
  func.func @transform_3(%arg0: i32) -> (i32, i32) {
    %c0_i32 = arith.constant 0 : i32
    %c0_i32_0 = arith.constant 0 : i32
    return %arg0, %c0_i32 : i32, i32
  }
  func.func @transform_4(%arg0: i32) -> (i32, i32) {
    %c0_i32 = arith.constant 0 : i32
    %c0_i32_0 = arith.constant 0 : i32
    %c0_i32_1 = arith.constant 0 : i32
    return %c0_i32, %c0_i32_0 : i32, i32
  }
  func.func @transform_5(%arg0: i32) -> (i32, i32) {
    %c0_i32 = arith.constant 0 : i32
    %c0_i32_0 = arith.constant 0 : i32
    %c0_i32_1 = arith.constant 0 : i32
    return %c0_i32, %c0_i32_0 : i32, i32
  }
  func.func @transform_6(%arg0: i32) -> (i32, i32) {
    %c0_i32 = arith.constant 0 : i32
    %c0_i32_0 = arith.constant 0 : i32
    %c0_i32_1 = arith.constant 0 : i32
    return %c0_i32, %c0_i32_0 : i32, i32
  }
  func.func @transform_7(%arg0: i32) -> (i32, i32) {
    %c0_i32 = arith.constant 0 : i32
    %c0_i32_0 = arith.constant 0 : i32
    %c0_i32_1 = arith.constant 0 : i32
    return %c0_i32, %c0_i32_0 : i32, i32
  }
  func.func @transform_8(%arg0: i32) -> (i32, i32) {
    %c0_i32 = arith.constant 0 : i32
    %c0_i32_0 = arith.constant 0 : i32
    %c0_i32_1 = arith.constant 0 : i32
    return %c0_i32, %c0_i32_0 : i32, i32
  }
  func.func @transform_9(%arg0: i32) -> (i32, i32) {
    %c0_i32 = arith.constant 0 : i32
    %c0_i32_0 = arith.constant 0 : i32
    %c0_i32_1 = arith.constant 0 : i32
    return %c0_i32, %c0_i32_0 : i32, i32
  }
  func.func @transform_10(%arg0: i32) -> (i32, i32) {
    %c0_i32 = arith.constant 0 : i32
    %c0_i32_0 = arith.constant 0 : i32
    %c0_i32_1 = arith.constant 0 : i32
    return %c0_i32, %c0_i32_0 : i32, i32
  }
  func.func @transform_11(%arg0: i32) -> (i32, i32) {
    %c0_i32 = arith.constant 0 : i32
    %c0_i32_0 = arith.constant 0 : i32
    return %arg0, %c0_i32 : i32, i32
  }
}

</mosaic_0001>

<bundles_post_ra>
// kernel: tpu_custom_call.1
= control target key start
LH: loop header
LB: loop body
LE: loop exit
PB: predicated region body
PF: predicated region fallthrough
CT: control target
= control target key end

     0   :  { %16 = vsyncpa [#allocation3], 0  ;;  %s3174_s0 = inlined_call_operand.hbm [shape: f32[16,32], index: 0, kind: input, shape index: {}]   ;;  %s3175_s1 = inlined_call_operand.hbm [shape: f32[16,64], index: 1, kind: input, shape index: {}]   ;;  %s3176_s2 = inlined_call_operand.hbm [shape: f32[16,128], index: 2, kind: input, shape index: {}]   ;;  %s3177_s3 = inlined_call_operand.hbm [shape: f32[16,128], index: 3, kind: input, shape index: {}]   ;;  %s3178_s4 = inlined_call_operand.hbm [shape: f32[32,128], index: 4, kind: input, shape index: {}]   ;;  %s3179_s5 = inlined_call_operand.hbm [shape: f32[64,128], index: 5, kind: input, shape index: {}]   ;;  %s3180_s6 = inlined_call_operand.hbm [shape: f32[128,128], index: 6, kind: input, shape index: {}]   ;;  %s3181_s7 = inlined_call_operand.hbm [shape: f32[128,128], index: 7, kind: input, shape index: {}]   ;;  %s3182_s8 = inlined_call_operand.hbm [shape: f32[128,128], index: 8, kind: input, shape index: {}]   ;;  %s3183_s9 = inlined_call_operand.hbm [shape: f32[128,128], index: 9, kind: input, shape index: {}]   ;;  %s3184_s10 = inlined_call_operand.vmem [shape: f32[12,128], index: 10, kind: input, shape index: {}]   ;;  %s3185_s11 = inlined_call_operand.hbm [shape: f32[16,128], index: 11, kind: output, shape index: {}]  }
   0x1   :  { %17 = vsyncpa [#allocation6], 0 }
   0x2   :  { %18 = vsyncpa [#allocation9], 0 }
   0x3   :  { %19 = vsyncpa [#allocation12], 0 }
   0x4   :  { %20 = vsyncpa [#allocation15], 0 }
   0x5   :  { %21 = vsyncpa [#allocation18], 0 }
   0x6   :  { %22 = vsyncpa [#allocation4], 0  ;;  %s2678_s17 = smov [#allocation5]   ;;  %s2679_s19 = smov [#allocation8]  }
   0x7   :  { %s40_s18 = sshll.u32 %s2678_s17, 4  ;;  %s64_s20 = sshll.u32 %s2679_s19, 4  ;;  %s41_s18 = int_to_ptr.vmem [resolvable:$true] %s40_s18  ;;  %s2751_s20 = int_to_ptr.vmem [resolvable:$true] %s64_s20 }
   0x8   :  { %s2422_s23 = scalar_lea.hbm %s3175_s1, 256 }
   0x9   :  { %p2423_p0 = scmp.ne.s32.totalorder %s3175_s1, %s2422_s23  ;;  %p2426_p1 = scmp.lt.u32.totalorder %s2422_s23, %s3175_s1 }
   0xb   :  { %p2428_p2 = pnand %p2426_p1, %p2423_p0 }
   0xd   :  { %2431 = shalt.err (!%p2428_p2)
}
   0xe   :  { %s2432_s28 = scalar_lea.vmem %s41_s18, 256  ;;  %p2437_p4 = scmp.lt.s32.totalorder %s41_s18, %s41_s18 }
   0xf   :  { %p2433_p3 = scmp.ne.s32.totalorder %s41_s18, %s2432_s28  ;;  %p2438_p5 = scmp.lt.s32.totalorder %s2432_s28, %s2432_s28 }
  0x11   :  { %p2439_p6 = por %p2438_p5, %p2437_p4 }
  0x13   :  { %p2440_p7 = pnand %p2439_p6, %p2433_p3 }
  0x15   :  { %2443 = shalt.err (!%p2440_p7)
}
  0x16   :  { %s2680_s29 = smov 128   ;;  %s2681_s30 = smov 8  }
  0x17   :  { %46 = dma.hbm_to_vmem [thread:$0]  %s3175_s1, 256, %s41_s18, [#allocation6], %s2680_s29, %s2680_s29, %s2681_s30  }
  0x18   :  { %s2444_s16 = scalar_lea.hbm %s3177_s3, 256 }
  0x19   :  { %p2445_p8 = scmp.ne.s32.totalorder %s3177_s3, %s2444_s16  ;;  %p2448_p9 = scmp.lt.u32.totalorder %s2444_s16, %s3177_s3 }
  0x1b   :  { %p2450_p10 = pnand %p2448_p9, %p2445_p8 }
  0x1d   :  { %2453 = shalt.err (!%p2450_p10)
}
  0x1e   :  { %s2454_s23 = scalar_lea.vmem %s2751_s20, 256  ;;  %p2459_p12 = scmp.lt.s32.totalorder %s2751_s20, %s2751_s20 }
  0x1f   :  { %p2455_p11 = scmp.ne.s32.totalorder %s2751_s20, %s2454_s23  ;;  %p2460_p13 = scmp.lt.s32.totalorder %s2454_s23, %s2454_s23 }
  0x21   :  { %p2461_p0 = por %p2460_p13, %p2459_p12 }
  0x23   :  { %p2462_p1 = pnand %p2461_p0, %p2455_p11 }
  0x25   :  { %2465 = shalt.err (!%p2462_p1)
}
  0x26   :  { %70 = dma.hbm_to_vmem [thread:$0]  %s3177_s3, 256, %s2751_s20, [#allocation9], %s2680_s29, %s2680_s29, %s2681_s30  }
  0x27   :  { %s2682_s24 = smov [#allocation11]   ;;  %s2683_s26 = smov [#allocation14]  }
  0x28   :  { %s88_s25 = sshll.u32 %s2682_s24, 4  ;;  %s112_s27 = sshll.u32 %s2683_s26, 4  ;;  %s89_s25 = int_to_ptr.vmem [resolvable:$true] %s88_s25  ;;  %s2788_s27 = int_to_ptr.vmem [resolvable:$true] %s112_s27 }
  0x29   :  { %s2466_s13 = scalar_lea.hbm %s3179_s5, 1024 }
  0x2a   :  { %p2467_p2 = scmp.ne.s32.totalorder %s3179_s5, %s2466_s13  ;;  %p2470_p3 = scmp.lt.u32.totalorder %s2466_s13, %s3179_s5 }
  0x2c   :  { %p2472_p4 = pnand %p2470_p3, %p2467_p2 }
  0x2e   :  { %2475 = shalt.err (!%p2472_p4)
}
  0x2f   :  { %s2476_s3 = scalar_lea.vmem %s89_s25, 1024  ;;  %p2481_p6 = scmp.lt.s32.totalorder %s89_s25, %s89_s25 }
  0x30   :  { %p2477_p5 = scmp.ne.s32.totalorder %s89_s25, %s2476_s3  ;;  %p2482_p7 = scmp.lt.s32.totalorder %s2476_s3, %s2476_s3 }
  0x32   :  { %p2483_p8 = por %p2482_p7, %p2481_p6 }
  0x34   :  { %p2484_p9 = pnand %p2483_p8, %p2477_p5 }
  0x36   :  { %2487 = shalt.err (!%p2484_p9)
}
  0x37   :  { %94 = dma.hbm_to_vmem [thread:$0]  %s3179_s5, 1024, %s89_s25, [#allocation12], %s2680_s29, %s2680_s29, %s2681_s30  }
  0x38   :  { %s2488_s23 = scalar_lea.hbm %s3181_s7, 2048 }
  0x39   :  { %p2489_p10 = scmp.ne.s32.totalorder %s3181_s7, %s2488_s23  ;;  %p2492_p11 = scmp.lt.u32.totalorder %s2488_s23, %s3181_s7 }
  0x3b   :  { %p2494_p12 = pnand %p2492_p11, %p2489_p10 }
  0x3d   :  { %2497 = shalt.err (!%p2494_p12)
}
  0x3e   :  { %s2498_s28 = scalar_lea.vmem %s2788_s27, 2048  ;;  %p2503_p0 = scmp.lt.s32.totalorder %s2788_s27, %s2788_s27 }
  0x3f   :  { %p2499_p13 = scmp.ne.s32.totalorder %s2788_s27, %s2498_s28  ;;  %p2504_p1 = scmp.lt.s32.totalorder %s2498_s28, %s2498_s28 }
  0x41   :  { %p2505_p2 = por %p2504_p1, %p2503_p0 }
  0x43   :  { %p2506_p3 = pnand %p2505_p2, %p2499_p13 }
  0x45   :  { %2509 = shalt.err (!%p2506_p3)
}
  0x46   :  { %118 = dma.hbm_to_vmem [thread:$0]  %s3181_s7, 2048, %s2788_s27, [#allocation15], %s2680_s29, %s2680_s29, %s2681_s30  }
  0x47   :  { %s2684_s12 = smov [#allocation2]   ;;  %s2685_s14 = smov [#allocation7]  }
  0x48   :  { %s28_s13 = sshll.u32 %s2684_s12, 4  ;;  %s52_s15 = sshll.u32 %s2685_s14, 4  ;;  %s29_s13 = int_to_ptr.vmem [resolvable:$true] %s28_s13  ;;  %s2825_s15 = int_to_ptr.vmem [resolvable:$true] %s52_s15 }
  0x49   :  { %s2510_s3 = scalar_lea.hbm %s3174_s0, 256 }
  0x4a   :  { %p2511_p4 = scmp.ne.s32.totalorder %s3174_s0, %s2510_s3  ;;  %p2514_p5 = scmp.lt.u32.totalorder %s2510_s3, %s3174_s0 }
  0x4c   :  { %p2516_p6 = pnand %p2514_p5, %p2511_p4 }
  0x4e   :  { %2519 = shalt.err (!%p2516_p6)
}
  0x4f   :  { %s2520_s7 = scalar_lea.vmem %s29_s13, 256  ;;  %p2525_p8 = scmp.lt.s32.totalorder %s29_s13, %s29_s13 }
  0x50   :  { %p2521_p7 = scmp.ne.s32.totalorder %s29_s13, %s2520_s7  ;;  %p2526_p9 = scmp.lt.s32.totalorder %s2520_s7, %s2520_s7 }
  0x52   :  { %p2527_p10 = por %p2526_p9, %p2525_p8 }
  0x54   :  { %p2528_p11 = pnand %p2527_p10, %p2521_p7 }
  0x56   :  { %2531 = shalt.err (!%p2528_p11)
}
  0x57   :  { %34 = dma.hbm_to_vmem [thread:$0]  %s3174_s0, 256, %s29_s13, [#allocation3], %s2680_s29, %s2680_s29, %s2681_s30  }
  0x58   :  { %s2532_s24 = scalar_lea.hbm %s3176_s2, 256 }
  0x59   :  { %p2533_p12 = scmp.ne.s32.totalorder %s3176_s2, %s2532_s24  ;;  %p2536_p13 = scmp.lt.u32.totalorder %s2532_s24, %s3176_s2 }
  0x5b   :  { %p2538_p0 = pnand %p2536_p13, %p2533_p12 }
  0x5d   :  { %2541 = shalt.err (!%p2538_p0)
}
  0x5e   :  { %s2542_s12 = scalar_lea.vmem %s2825_s15, 256  ;;  %p2547_p2 = scmp.lt.s32.totalorder %s2825_s15, %s2825_s15 }
  0x5f   :  { %p2543_p1 = scmp.ne.s32.totalorder %s2825_s15, %s2542_s12  ;;  %p2548_p3 = scmp.lt.s32.totalorder %s2542_s12, %s2542_s12 }
  0x61   :  { %p2549_p4 = por %p2548_p3, %p2547_p2 }
  0x63   :  { %p2550_p5 = pnand %p2549_p4, %p2543_p1 }
  0x65   :  { %2553 = shalt.err (!%p2550_p5)
}
  0x66   :  { %58 = dma.hbm_to_vmem [thread:$0]  %s3176_s2, 256, %s2825_s15, [#allocation6], %s2680_s29, %s2680_s29, %s2681_s30  }
  0x67   :  { %s2686_s14 = smov [#allocation10]   ;;  %s2687_s17 = smov [#allocation13]  }
  0x68   :  { %s76_s16 = sshll.u32 %s2686_s14, 4  ;;  %s100_s3 = sshll.u32 %s2687_s17, 4  ;;  %s77_s16 = int_to_ptr.vmem [resolvable:$true] %s76_s16  ;;  %s2862_s3 = int_to_ptr.vmem [resolvable:$true] %s100_s3 }
  0x69   :  { %s2554_s21 = scalar_lea.hbm %s3178_s4, 512 }
  0x6a   :  { %p2555_p6 = scmp.ne.s32.totalorder %s3178_s4, %s2554_s21  ;;  %p2558_p7 = scmp.lt.u32.totalorder %s2554_s21, %s3178_s4 }
  0x6c   :  { %p2560_p8 = pnand %p2558_p7, %p2555_p6 }
  0x6e   :  { %2563 = shalt.err (!%p2560_p8)
}
  0x6f   :  { %s2564_s2 = scalar_lea.vmem %s77_s16, 512  ;;  %p2569_p10 = scmp.lt.s32.totalorder %s77_s16, %s77_s16 }
  0x70   :  { %p2565_p9 = scmp.ne.s32.totalorder %s77_s16, %s2564_s2  ;;  %p2570_p11 = scmp.lt.s32.totalorder %s2564_s2, %s2564_s2 }
  0x72   :  { %p2571_p12 = por %p2570_p11, %p2569_p10 }
  0x74   :  { %p2572_p13 = pnand %p2571_p12, %p2565_p9 }
  0x76   :  { %2575 = shalt.err (!%p2572_p13)
}
  0x77   :  { %82 = dma.hbm_to_vmem [thread:$0]  %s3178_s4, 512, %s77_s16, [#allocation9], %s2680_s29, %s2680_s29, %s2681_s30  }
  0x78   :  { %s2576_s26 = scalar_lea.hbm %s3180_s6, 2048 }
  0x79   :  { %p2577_p0 = scmp.ne.s32.totalorder %s3180_s6, %s2576_s26  ;;  %p2580_p1 = scmp.lt.u32.totalorder %s2576_s26, %s3180_s6 }
  0x7b   :  { %p2582_p2 = pnand %p2580_p1, %p2577_p0 }
  0x7d   :  { %2585 = shalt.err (!%p2582_p2)
}
  0x7e   :  { %s2586_s0 = scalar_lea.vmem %s2862_s3, 2048  ;;  %p2591_p4 = scmp.lt.s32.totalorder %s2862_s3, %s2862_s3 }
  0x7f   :  { %p2587_p3 = scmp.ne.s32.totalorder %s2862_s3, %s2586_s0  ;;  %p2592_p5 = scmp.lt.s32.totalorder %s2586_s0, %s2586_s0 }
  0x81   :  { %p2593_p6 = por %p2592_p5, %p2591_p4 }
  0x83   :  { %p2594_p7 = pnand %p2593_p6, %p2587_p3 }
  0x85   :  { %2597 = shalt.err (!%p2594_p7)
}
  0x86   :  { %106 = dma.hbm_to_vmem [thread:$0]  %s3180_s6, 2048, %s2862_s3, [#allocation12], %s2680_s29, %s2680_s29, %s2681_s30  }
  0x87   :  { %s2688_s14 = smov [#allocation16]   ;;  %s2689_s17 = smov [#allocation17]  }
  0x88   :  { %s124_s16 = sshll.u32 %s2688_s14, 4  ;;  %s136_s20 = sshll.u32 %s2689_s17, 4  ;;  %s125_s16 = int_to_ptr.vmem [resolvable:$true] %s124_s16  ;;  %s2899_s20 = int_to_ptr.vmem [resolvable:$true] %s136_s20 }
  0x89   :  { %s2598_s22 = scalar_lea.hbm %s3182_s8, 2048 }
  0x8a   :  { %p2599_p8 = scmp.ne.s32.totalorder %s3182_s8, %s2598_s22  ;;  %p2602_p9 = scmp.lt.u32.totalorder %s2598_s22, %s3182_s8 }
  0x8c   :  { %p2604_p10 = pnand %p2602_p9, %p2599_p8 }
  0x8e   :  { %2607 = shalt.err (!%p2604_p10)
}
  0x8f   :  { %s2608_s6 = scalar_lea.vmem %s125_s16, 2048  ;;  %p2613_p12 = scmp.lt.s32.totalorder %s125_s16, %s125_s16 }
  0x90   :  { %p2609_p11 = scmp.ne.s32.totalorder %s125_s16, %s2608_s6  ;;  %p2614_p13 = scmp.lt.s32.totalorder %s2608_s6, %s2608_s6 }
  0x92   :  { %p2615_p0 = por %p2614_p13, %p2613_p12 }
  0x94   :  { %p2616_p1 = pnand %p2615_p0, %p2609_p11 }
  0x96   :  { %2619 = shalt.err (!%p2616_p1)
}
  0x97   :  { %130 = dma.hbm_to_vmem [thread:$0]  %s3182_s8, 2048, %s125_s16, [#allocation15], %s2680_s29, %s2680_s29, %s2681_s30  }
  0x98   :  { %s2620_s24 = scalar_lea.hbm %s3183_s9, 2048 }
  0x99   :  { %p2621_p2 = scmp.ne.s32.totalorder %s3183_s9, %s2620_s24  ;;  %p2624_p3 = scmp.lt.u32.totalorder %s2620_s24, %s3183_s9 }
  0x9b   :  { %p2626_p4 = pnand %p2624_p3, %p2621_p2 }
  0x9d   :  { %2629 = shalt.err (!%p2626_p4)
}
  0x9e   :  { %s2630_s12 = scalar_lea.vmem %s2899_s20, 2048  ;;  %p2635_p6 = scmp.lt.s32.totalorder %s2899_s20, %s2899_s20 }
  0x9f   :  { %p2631_p5 = scmp.ne.s32.totalorder %s2899_s20, %s2630_s12  ;;  %p2636_p7 = scmp.lt.s32.totalorder %s2630_s12, %s2630_s12 }
  0xa1   :  { %p2637_p8 = por %p2636_p7, %p2635_p6 }
  0xa3   :  { %p2638_p9 = pnand %p2637_p8, %p2631_p5 }
  0xa5   :  { %2641 = shalt.err (!%p2638_p9)
}
  0xa6   :  { %142 = dma.hbm_to_vmem [thread:$0]  %s3183_s9, 2048, %s2899_s20, [#allocation18], %s2680_s29, %s2680_s29, %s2681_s30  }
  0xa7   :  { %2664 = dma.done.wait [#allocation3], 256  }
  0xa8   :  { %2665 = vsyncadd [#allocation3], 4294967040 }
  0xa9   :  { %2666 = dma.done.wait [#allocation6], 512  }
  0xaa   :  { %2667 = vsyncadd [#allocation6], 4294966784 }
  0xab   :  { %2668 = dma.done.wait [#allocation9], 768  }
  0xac   :  { %2669 = vsyncadd [#allocation9], 4294966528 }
  0xad   :  { %2670 = dma.done.wait [#allocation12], 3072  }
  0xae   :  { %2671 = vsyncadd [#allocation12], 4294964224 }
  0xaf   :  { %2672 = dma.done.wait [#allocation15], 4096  }
  0xb0   :  { %2673 = vsyncadd [#allocation15], 4294963200 }
  0xb1   :  { %2674 = dma.done.wait [#allocation18], 2048  }
  0xb2   :  { %2675 = vsyncadd [#allocation18], 4294965248  ;;  %vm203_vm0 = vcmask 261120   ;;  %v195_v0 = vld [vmem:[#allocation10] sm:$0xff]  ;;  %v196_v1 = vld [vmem:[#allocation10 + $0x8] sm:$0xff]  ;;  %v199_v35 = vlaneseq  ;;  %vm487_vm1 = vcmask 523264  }
  0xb3   :  { %v197_v2 = vld [vmem:[#allocation10 + $0x10] sm:$0xff]  ;;  %v2015_v3 = vpack.c.bf16 %v196_v1, %v195_v0  ;;  %v198_v4 = vld [vmem:[#allocation10 + $0x18] sm:$0xff]  ;;  %v193_v5 = vld [vmem:[#allocation2] sm:$0xff] }
  0xb4   :  { %v2019_v6 = vpack.c.bf16 %v198_v4, %v197_v2  ;;  %1608 = vmatprep.mubr.msk.f32.mxu1 %vm203_vm0, %v193_v5  ;;  %v177_v7 = vld [vmem:[#allocation17] sm:$0xff]  ;;  %v178_v8 = vld [vmem:[#allocation17 + $0x8] sm:$0xff]  ;;  %v179_v9 = vld [vmem:[#allocation17 + $0x10] sm:$0xff]  ;;  %v2987_v36 = vshrl.u32 %v199_v35, 7 }
  0xb5   :  { %2016 = vmatprep.subr.bf16.mxu1 %v2015_v3  ;;  %v2937_v10 = vpack.c.bf16 %v178_v8, %v177_v7  ;;  %v180_v11 = vld [vmem:[#allocation17 + $0x18] sm:$0xff]  ;;  %v181_v13 = vld [vmem:[#allocation17 + $0x20] sm:$0xff]  ;;  %v182_v14 = vld [vmem:[#allocation17 + $0x28] sm:$0xff] }
  0xb6   :  { %2018 = vmatpush3.bf16.msra.mxu1 %v2015_v3  ;;  %v2939_v12 = vpack.c.bf16 %v180_v11, %v179_v9  ;;  %v194_v15 = vld [vmem:[#allocation2 + $0x8] sm:$0xff]  ;;  %v2945_v16 = vpack.c.bf16 %v182_v14, %v181_v13  ;;  %v183_v17 = vld [vmem:[#allocation17 + $0x30] sm:$0xff]  ;;  %v184_v18 = vld [vmem:[#allocation17 + $0x38] sm:$0xff]  ;;  %v201_v37 = vsub.s32 0, %v2987_v36  ;;  %v485_v61 = vsub.s32 3, %v2987_v36 }
  0xb7   :  { %2020 = vmatprep.subr.bf16.mxu1 %v2019_v6  ;;  %2056 = vmatprep.subr.bf16.mxu0 %v2937_v10  ;;  %v2952_v19 = vpack.c.bf16 %v184_v18, %v183_v17  ;;  %v185_v20 = vld [vmem:[#allocation17 + $0x40] sm:$0xff]  ;;  %v186_v21 = vld [vmem:[#allocation17 + $0x48] sm:$0xff]  ;;  %v187_v23 = vld [vmem:[#allocation17 + $0x50] sm:$0xff] }
  0xb8   :  { %2058 = vmatpush3.bf16.msra.mxu0 %v2937_v10  ;;  %v2958_v22 = vpack.c.bf16 %v186_v21, %v185_v20  ;;  %v188_v24 = vld [vmem:[#allocation17 + $0x58] sm:$0xff]  ;;  %v189_v26 = vld [vmem:[#allocation17 + $0x60] sm:$0xff]  ;;  %v190_v27 = vld [vmem:[#allocation17 + $0x68] sm:$0xff] }
  0xb9   :  { %2060 = vmatprep.subr.bf16.mxu0 %v2939_v12  ;;  %v2964_v25 = vpack.c.bf16 %v188_v24, %v187_v23  ;;  %v2970_v28 = vpack.c.bf16 %v190_v27, %v189_v26  ;;  %v191_v29 = vld [vmem:[#allocation17 + $0x70] sm:$0xff]  ;;  %v192_v30 = vld [vmem:[#allocation17 + $0x78] sm:$0xff]  ;;  %v475_v32 = vld [vmem:[#allocation11] sm:$0xff] }
  0xba   :  { %2022 = vmatpush3.bf16.msra.mxu1 %v2019_v6  ;;  %v2980_v31 = vpack.c.bf16 %v192_v30, %v191_v29  ;;  %v476_v33 = vld [vmem:[#allocation11 + $0x8] sm:$0xff]  ;;  %v2993_v38 = vld [vmem:[%s3184_s10] sm:$0xff]  ;;  %v477_v41 = vld [vmem:[#allocation11 + $0x10] sm:$0xff] }
  0xbb   :  { %2024 = vmatprep.subr.bf16.mxu1 %v2937_v10  ;;  %v2087_v34 = vpack.c.bf16 %v476_v33, %v475_v32  ;;  %v202_v39 = vrot.slane %v2993_v38, %v201_v37  ;;  %v478_v42 = vld [vmem:[#allocation11 + $0x18] sm:$0xff]  ;;  %v473_v47 = vld [vmem:[#allocation5] sm:$0xff]  ;;  %v479_v48 = vld [vmem:[#allocation11 + $0x20] sm:$0xff]  ;;  %v486_v62 = vrot.slane %v2993_v38, %v485_v61 }
  0xbc   :  { %2062 = vmatpush3.bf16.msra.mxu0 %v2939_v12  ;;  %v2091_v46 = vpack.c.bf16 %v478_v42, %v477_v41  ;;  %v480_v49 = vld [vmem:[#allocation11 + $0x28] sm:$0xff]  ;;  %v481_v51 = vld [vmem:[#allocation11 + $0x30] sm:$0xff]  ;;  %v482_v52 = vld [vmem:[#allocation11 + $0x38] sm:$0xff] }
  0xbd   :  { %1609 = vmatmul.mubr.msk.f32.vlgmr.msra.gmra.mrb[0].mxu1 %vm203_vm0, %v194_v15  ;;  %2064 = vmatprep.subr.bf16.mxu0 %v2945_v16  ;;  %v2095_v50 = vpack.c.bf16 %v480_v49, %v479_v48  ;;  %v2099_v53 = vpack.c.bf16 %v482_v52, %v481_v51  ;;  %v474_v54 = vld [vmem:[#allocation5 + $0x8] sm:$0xff]  ;;  %v741_v3 = vld [vmem:[#allocation14] sm:$0xff]  ;;  %v742_v4 = vld [vmem:[#allocation14 + $0x8] sm:$0xff] }
  0xbe   :  { %2026 = vmatpush3.bf16.msra.mxu1 %v2937_v10  ;;  %v743_v5 = vld [vmem:[#allocation14 + $0x10] sm:$0xff]  ;;  %v2167_v6 = vpack.c.bf16 %v742_v4, %v741_v3  ;;  %v744_v7 = vld [vmem:[#allocation14 + $0x18] sm:$0xff]  ;;  %v745_v9 = vld [vmem:[#allocation14 + $0x20] sm:$0xff] }
  0xbf   :  { %2028 = vmatprep.subr.bf16.mxu1 %v2939_v12  ;;  %v2171_v8 = vpack.c.bf16 %v744_v7, %v743_v5  ;;  %v746_v11 = vld [vmem:[#allocation14 + $0x28] sm:$0xff]  ;;  %v747_v26 = vld [vmem:[#allocation14 + $0x30] sm:$0xff]  ;;  %v748_v27 = vld [vmem:[#allocation14 + $0x38] sm:$0xff] }
  0xc0   :  { %2066 = vmatpush3.bf16.msra.mxu0 %v2945_v16  ;;  %v2175_v13 = vpack.c.bf16 %v746_v11, %v745_v9  ;;  %v2179_v29 = vpack.c.bf16 %v748_v27, %v747_v26  ;;  %v749_v30 = vld [vmem:[#allocation14 + $0x40] sm:$0xff]  ;;  %v750_v32 = vld [vmem:[#allocation14 + $0x48] sm:$0xff]  ;;  %v751_v33 = vld [vmem:[#allocation14 + $0x50] sm:$0xff] }
  0xc1   :  { %2068 = vmatprep.subr.bf16.mxu0 %v2952_v19  ;;  %v752_v35 = vld [vmem:[#allocation14 + $0x58] sm:$0xff]  ;;  %v754_v41 = vld [vmem:[#allocation14 + $0x68] sm:$0xff] }
  0xc2   :  { %2030 = vmatpush3.bf16.msra.mxu1 %v2939_v12  ;;  %v462_v27 = vld [vmem:[#allocation13 + $0x28] sm:$0xff] }
  0xc3   :  { %2032 = vmatprep.subr.bf16.mxu1 %v2945_v16 }
  0xc4   :  { %2070 = vmatpush3.bf16.msra.mxu0 %v2952_v19 }
  0xc5   :  { %2072 = vmatprep.subr.bf16.mxu0 %v2958_v22 }
  0xc6   :  { %2034 = vmatpush3.bf16.msra.mxu1 %v2945_v16 }
  0xc7   :  { %2036 = vmatprep.subr.bf16.mxu1 %v2952_v19 }
  0xc8   :  { %2074 = vmatpush3.bf16.msra.mxu0 %v2958_v22 }
  0xc9   :  { %2076 = vmatprep.subr.bf16.mxu0 %v2964_v25 }
  0xca   :  { %2038 = vmatpush3.bf16.msra.mxu1 %v2952_v19 }
  0xcb   :  { %2040 = vmatprep.subr.bf16.mxu1 %v2958_v22 }
  0xcc   :  { %2078 = vmatpush3.bf16.msra.mxu0 %v2964_v25 }
  0xcd   :  { %2080 = vmatprep.subr.bf16.mxu0 %v2970_v28 }
  0xce   :  { %2042 = vmatpush3.bf16.msra.mxu1 %v2958_v22 }
  0xcf   :  { %2044 = vmatprep.subr.bf16.mxu1 %v2964_v25 }
  0xd0   :  { %2082 = vmatpush3.bf16.msra.mxu0 %v2970_v28 }
  0xd1   :  { %2084 = vmatprep.subr.bf16.mxu0 %v2980_v31 }
  0xd2   :  { %2046 = vmatpush3.bf16.msra.mxu1 %v2964_v25 }
  0xd3   :  { %2048 = vmatprep.subr.bf16.mxu1 %v2970_v28 }
  0xd4   :  { %2086 = vmatpush3.bf16.msra.mxu0 %v2980_v31 }
  0xd5   :  { %2104 = vmatprep.subr.bf16.mxu0 %v2937_v10 }
  0xd6   :  { %2050 = vmatpush3.bf16.msra.mxu1 %v2970_v28 }
  0xd7   :  { %2052 = vmatprep.subr.bf16.mxu1 %v2980_v31 }
  0xda   :  { %2054 = vmatpush3.bf16.msra.mxu1 %v2980_v31 }
  0xdb   :  { %2088 = vmatprep.subr.bf16.mxu1 %v2087_v34 }
 0x190   :  { %v1610_v40 = vpop.f32.mrb[0].mxu1 }
 0x191   :  { %v276_v43 = vpop.f32.mrb[1].mxu1  ;;  %v282_v45 = vadd.f32 %v1610_v40, %v202_v39  ;;  %v753_v40 = vld [vmem:[#allocation14 + $0x60] sm:$0xff] }
 0x192   :  { %v277_v44 = vadd.f32 %v276_v43, %v202_v39  ;;  %v2187_v39 = vpack.c.bf16 %v752_v35, %v751_v33  ;;  %v2191_v42 = vpack.c.bf16 %v754_v41, %v753_v40  ;;  %v755_v43 = vld [vmem:[#allocation14 + $0x70] sm:$0xff]  ;;  %v466_v35 = vld [vmem:[#allocation13 + $0x48] sm:$0xff]  ;;  %v468_v41 = vld [vmem:[#allocation13 + $0x58] sm:$0xff] }
 0x193   :  { %v467_v40 = vld [vmem:[#allocation13 + $0x50] sm:$0xff] }
 0x194   :  { %1643 = vmatprep.mubr.f32.mxu1 %v277_v44 }
 0x195   :  { %1644 = vmatmul.mubr.f32.vlgmr.msra.gmra.mrb[2].mxu1 %v282_v45 }
 0x196   :  { %2090 = vmatpush3.bf16.msra.mxu1 %v2087_v34  ;;  %1697 = vmatprep.mubr.msk.f32.mxu1 %vm487_vm1, %v473_v47  ;;  %v2183_v34 = vpack.c.bf16 %v750_v32, %v749_v30  ;;  %v458_v47 = vld [vmem:[#allocation13 + $0x8] sm:$0xff]  ;;  %v463_v30 = vld [vmem:[#allocation13 + $0x30] sm:$0xff]  ;;  %v464_v32 = vld [vmem:[#allocation13 + $0x38] sm:$0xff] }
 0x197   :  { %2092 = vmatprep.subr.bf16.mxu1 %v2091_v46  ;;  %v2211_v33 = vpack.c.bf16 %v464_v32, %v463_v30  ;;  %v1100_v30 = vld [vmem:[#allocation16 + $0x38] sm:$0xff] }
 0x19a   :  { %2094 = vmatpush3.bf16.msra.mxu1 %v2091_v46  ;;  %v457_v46 = vld [vmem:[#allocation13] sm:$0xff] }
 0x19b   :  { %2096 = vmatprep.subr.bf16.mxu1 %v2095_v50  ;;  %v2199_v48 = vpack.c.bf16 %v458_v47, %v457_v46  ;;  %v471_v47 = vld [vmem:[#allocation13 + $0x70] sm:$0xff] }
 0x19e   :  { %2098 = vmatpush3.bf16.msra.mxu1 %v2095_v50 }
 0x19f   :  { %2100 = vmatprep.subr.bf16.mxu1 %v2099_v53 }
 0x1a2   :  { %2102 = vmatpush3.bf16.msra.mxu1 %v2099_v53 }
 0x1a3   :  { %2136 = vmatprep.subr.bf16.mxu1 %v2937_v10 }
 0x1a5   :  { %1698 = vmatmul.mubr.msk.f32.vlgmr.msra.gmra.mrb[4].mxu1 %vm487_vm1, %v474_v54  ;;  %v445_v54 = vsub.s32 1, %v2987_v36 }
 0x1a6   :  { %2138 = vmatpush3.bf16.msra.mxu1 %v2937_v10 }
 0x1a7   :  { %2140 = vmatprep.subr.bf16.mxu1 %v2939_v12 }
 0x1aa   :  { %2142 = vmatpush3.bf16.msra.mxu1 %v2939_v12 }
 0x1ab   :  { %2144 = vmatprep.subr.bf16.mxu1 %v2945_v16 }
 0x1ae   :  { %2146 = vmatpush3.bf16.msra.mxu1 %v2945_v16 }
 0x1af   :  { %2148 = vmatprep.subr.bf16.mxu1 %v2952_v19 }
 0x1b2   :  { %2150 = vmatpush3.bf16.msra.mxu1 %v2952_v19 }
 0x1b3   :  { %2152 = vmatprep.subr.bf16.mxu1 %v2958_v22 }
 0x1b6   :  { %2154 = vmatpush3.bf16.msra.mxu1 %v2958_v22 }
 0x1b7   :  { %2156 = vmatprep.subr.bf16.mxu1 %v2964_v25 }
 0x1ba   :  { %2158 = vmatpush3.bf16.msra.mxu1 %v2964_v25 }
 0x1bb   :  { %2160 = vmatprep.subr.bf16.mxu1 %v2970_v28 }
 0x1be   :  { %2162 = vmatpush3.bf16.msra.mxu1 %v2970_v28 }
 0x1bf   :  { %2164 = vmatprep.subr.bf16.mxu1 %v2980_v31 }
 0x1c2   :  { %2166 = vmatpush3.bf16.msra.mxu1 %v2980_v31 }
 0x1c3   :  { %2232 = vmatprep.subr.bf16.mxu1 %v2937_v10 }
 0x268   :  { %v1645_v55 = vpop.f32.mrb[2].mxu1 }
 0x269   :  { %v3017_v56 = vsub.f32 %v282_v45, %v1645_v55  ;;  %v351_v57 = vpop.f32.mrb[3].mxu1 }
 0x26a   :  { %v3019_v58 = vsub.f32 %v277_v44, %v351_v57  ;;  %v756_v44 = vld [vmem:[#allocation14 + $0x78] sm:$0xff]  ;;  %v729_v57 = vsub.s32 4, %v2987_v36 }
 0x26b   :  { %v363_v60 = vmul.f32 %v3017_v56, %v3017_v56  ;;  %v2195_v45 = vpack.c.bf16 %v756_v44, %v755_v43  ;;  %v469_v43 = vld [vmem:[#allocation13 + $0x60] sm:$0xff]  ;;  %v470_v44 = vld [vmem:[#allocation13 + $0x68] sm:$0xff] }
 0x26c   :  { %v362_v59 = vmul.f32 %v3019_v58, %v3019_v58 }
 0x26e   :  { %1678 = vmatprep.mubr.f32.mxu0 %v362_v59  ;;  %v735_v59 = vsub.s32 5, %v2987_v36 }
 0x26f   :  { %1679 = vmatmul.mubr.f32.vlgmr.msra.gmra.mrb[0].mxu0 %v363_v60 }
 0x270   :  { %2106 = vmatpush3.bf16.msra.mxu0 %v2937_v10  ;;  %v736_v3 = vrot.slane %v2993_v38, %v735_v59  ;;  %v914_v59 = vld [vmem:[#allocation7 + $0x8] sm:$0xff] }
 0x271   :  { %2108 = vmatprep.subr.bf16.mxu0 %v2939_v12 }
 0x274   :  { %2110 = vmatpush3.bf16.msra.mxu0 %v2939_v12 }
 0x275   :  { %2112 = vmatprep.subr.bf16.mxu0 %v2945_v16 }
 0x278   :  { %2114 = vmatpush3.bf16.msra.mxu0 %v2945_v16  ;;  %v1699_v63 = vpop.f32.mrb[4].mxu1 }
 0x279   :  { %2116 = vmatprep.subr.bf16.mxu0 %v2952_v19  ;;  %v560_v0 = vpop.f32.mrb[5].mxu1  ;;  %v566_v2 = vadd.f32 %v1699_v63, %v486_v62  ;;  %v451_v63 = vsub.s32 2, %v2987_v36 }
 0x27a   :  { %v561_v1 = vadd.f32 %v560_v0, %v486_v62  ;;  %v446_v62 = vrot.slane %v2993_v38, %v445_v54  ;;  %v730_v0 = vrot.slane %v2993_v38, %v729_v57 }
 0x27c   :  { %2118 = vmatpush3.bf16.msra.mxu0 %v2952_v19  ;;  %1732 = vmatprep.mubr.f32.mxu0 %v561_v1 }
 0x27d   :  { %2120 = vmatprep.subr.bf16.mxu0 %v2958_v22 }
 0x280   :  { %2122 = vmatpush3.bf16.msra.mxu0 %v2958_v22 }
 0x281   :  { %2124 = vmatprep.subr.bf16.mxu0 %v2964_v25 }
 0x284   :  { %2126 = vmatpush3.bf16.msra.mxu0 %v2964_v25 }
 0x285   :  { %2128 = vmatprep.subr.bf16.mxu0 %v2970_v28 }
 0x288   :  { %2130 = vmatpush3.bf16.msra.mxu0 %v2970_v28 }
 0x289   :  { %2132 = vmatprep.subr.bf16.mxu0 %v2980_v31 }
 0x28c   :  { %2134 = vmatpush3.bf16.msra.mxu0 %v2980_v31 }
 0x28d   :  { %2168 = vmatprep.subr.bf16.mxu0 %v2167_v6 }
 0x28f   :  { %1733 = vmatmul.mubr.f32.vlgmr.msra.gmra.mrb[2].mxu0 %v566_v2 }
 0x290   :  { %2170 = vmatpush3.bf16.msra.mxu0 %v2167_v6 }
 0x291   :  { %2172 = vmatprep.subr.bf16.mxu0 %v2171_v8 }
 0x294   :  { %2174 = vmatpush3.bf16.msra.mxu0 %v2171_v8 }
 0x295   :  { %2176 = vmatprep.subr.bf16.mxu0 %v2175_v13 }
 0x298   :  { %2178 = vmatpush3.bf16.msra.mxu0 %v2175_v13 }
 0x299   :  { %2180 = vmatprep.subr.bf16.mxu0 %v2179_v29 }
 0x29c   :  { %2182 = vmatpush3.bf16.msra.mxu0 %v2179_v29 }
 0x29d   :  { %2184 = vmatprep.subr.bf16.mxu0 %v2183_v34 }
 0x2a0   :  { %2186 = vmatpush3.bf16.msra.mxu0 %v2183_v34  ;;  %v465_v34 = vld [vmem:[#allocation13 + $0x40] sm:$0xff] }
 0x2a1   :  { %2188 = vmatprep.subr.bf16.mxu0 %v2187_v39 }
 0x2a4   :  { %2190 = vmatpush3.bf16.msra.mxu0 %v2187_v39  ;;  %v2215_v39 = vpack.c.bf16 %v466_v35, %v465_v34  ;;  %v1102_v34 = vld [vmem:[#allocation16 + $0x48] sm:$0xff]  ;;  %v1103_v35 = vld [vmem:[#allocation16 + $0x50] sm:$0xff] }
 0x2a5   :  { %2192 = vmatprep.subr.bf16.mxu0 %v2191_v42 }
 0x2a8   :  { %2194 = vmatpush3.bf16.msra.mxu0 %v2191_v42 }
 0x2a9   :  { %2196 = vmatprep.subr.bf16.mxu0 %v2195_v45 }
 0x2ac   :  { %2198 = vmatpush3.bf16.msra.mxu0 %v2195_v45  ;;  %v2223_v45 = vpack.c.bf16 %v470_v44, %v469_v43  ;;  %v1107_v44 = vld [vmem:[#allocation16 + $0x70] sm:$0xff] }
 0x2ad   :  { %2200 = vmatprep.subr.bf16.mxu0 %v2199_v48 }
 0x342   :  { %v3044_v14 = vpop.f32.mrb[0].mxu0 }
 0x343   :  { %v430_v15 = vpop.f32.mrb[1].mxu0 }
 0x344   :  { %v431_v49 = vadd.f32 1e-05, %v430_v15  ;;  %v459_v15 = vld [vmem:[#allocation13 + $0x10] sm:$0xff] }
 0x346   :  { %2406 = vrsqrt.f32 %v431_v49 }
 0x350   :  { %v2407_v55 = vpop.eup %2406 }
 0x351   :  { %v441_v60 = vmul.f32 %v2407_v55, %v3019_v58  ;;  %v452_v58 = vrot.slane %v2993_v38, %v451_v63 }
 0x353   :  { %v447_v6 = vmul.f32 %v446_v62, %v441_v60 }
 0x355   :  { %v453_v13 = vadd.f32 %v452_v58, %v447_v6 }
 0x357   :  { %v455_v26 = vmax.f32 %v453_v13, 0.0 }
 0x362   :  { %v1734_v17 = vpop.f32.mrb[2].mxu0 }
 0x363   :  { %v3046_v18 = vsub.f32 %v566_v2, %v1734_v17  ;;  %v635_v20 = vpop.f32.mrb[3].mxu0  ;;  %v460_v17 = vld [vmem:[#allocation13 + $0x18] sm:$0xff] }
 0x364   :  { %v3048_v21 = vsub.f32 %v561_v1, %v635_v20 }
 0x365   :  { %v647_v24 = vmul.f32 %v3046_v18, %v3046_v18 }
 0x366   :  { %v646_v23 = vmul.f32 %v3048_v21, %v3048_v21 }
 0x368   :  { %1767 = vmatprep.mubr.f32.mxu1 %v646_v23 }
 0x369   :  { %1768 = vmatmul.mubr.f32.vlgmr.msra.gmra.mrb[6].mxu1 %v647_v24  ;;  %v2203_v24 = vpack.c.bf16 %v460_v17, %v459_v15 }
 0x36a   :  { %2234 = vmatpush3.bf16.msra.mxu1 %v2937_v10 }
 0x36b   :  { %2236 = vmatprep.subr.bf16.mxu1 %v2939_v12 }
 0x36e   :  { %2238 = vmatpush3.bf16.msra.mxu1 %v2939_v12 }
 0x36f   :  { %2240 = vmatprep.subr.bf16.mxu1 %v2945_v16 }
 0x372   :  { %2242 = vmatpush3.bf16.msra.mxu1 %v2945_v16 }
 0x373   :  { %2244 = vmatprep.subr.bf16.mxu1 %v2952_v19 }
 0x376   :  { %2246 = vmatpush3.bf16.msra.mxu1 %v2952_v19 }
 0x377   :  { %2248 = vmatprep.subr.bf16.mxu1 %v2958_v22 }
 0x37a   :  { %2250 = vmatpush3.bf16.msra.mxu1 %v2958_v22 }
 0x37b   :  { %2252 = vmatprep.subr.bf16.mxu1 %v2964_v25 }
 0x37e   :  { %2254 = vmatpush3.bf16.msra.mxu1 %v2964_v25 }
 0x37f   :  { %2256 = vmatprep.subr.bf16.mxu1 %v2970_v28 }
 0x382   :  { %2258 = vmatpush3.bf16.msra.mxu1 %v2970_v28 }
 0x383   :  { %2260 = vmatprep.subr.bf16.mxu1 %v2980_v31 }
 0x386   :  { %2262 = vmatpush3.bf16.msra.mxu1 %v2980_v31 }
 0x387   :  { %2264 = vmatprep.subr.bf16.mxu1 %v2937_v10 }
 0x43c   :  { %v1769_v50 = vpop.f32.mrb[6].mxu1 }
 0x43d   :  { %v720_v51 = vadd.f32 1e-05, %v1769_v50  ;;  %v714_v52 = vpop.f32.mrb[7].mxu1 }
 0x43e   :  { %v715_v53 = vadd.f32 1e-05, %v714_v52 }
 0x43f   :  { %2408 = vrsqrt.f32 %v720_v51 }
 0x440   :  { %2410 = vrsqrt.f32 %v715_v53  ;;  %v909_v53 = vsub.s32 6, %v2987_v36 }
 0x442   :  { %v910_v55 = vrot.slane %v2993_v38, %v909_v53 }
 0x449   :  { %v2409_v1 = vpop.eup %2408 }
 0x44a   :  { %v2411_v2 = vpop.eup %2410  ;;  %v726_v4 = vmul.f32 %v2409_v1, %v3046_v18  ;;  %v461_v18 = vld [vmem:[#allocation13 + $0x20] sm:$0xff] }
 0x44b   :  { %v725_v5 = vmul.f32 %v2411_v2, %v3048_v21  ;;  %v436_v21 = vadd.f32 1e-05, %v3044_v14  ;;  %v2207_v29 = vpack.c.bf16 %v462_v27, %v461_v18  ;;  %v2219_v14 = vpack.c.bf16 %v468_v41, %v467_v40  ;;  %v1097_v18 = vld [vmem:[#allocation16 + $0x20] sm:$0xff]  ;;  %v1098_v27 = vld [vmem:[#allocation16 + $0x28] sm:$0xff]  ;;  %v1104_v40 = vld [vmem:[#allocation16 + $0x58] sm:$0xff] }
 0x44c   :  { %v732_v7 = vmul.f32 %v730_v0, %v726_v4  ;;  %v918_v4 = vld [vmem:[#allocation8 + $0x8] sm:$0xff]  ;;  %v2315_v41 = vpack.c.bf16 %v1104_v40, %v1103_v35 }
 0x44d   :  { %v731_v8 = vmul.f32 %v730_v0, %v725_v5  ;;  %2412 = vrsqrt.f32 %v436_v21  ;;  %v913_v0 = vld [vmem:[#allocation7] sm:$0xff]  ;;  %v2303_v21 = vpack.c.bf16 %v1098_v27, %v1097_v18 }
 0x44e   :  { %v738_v9 = vadd.f32 %v736_v3, %v732_v7  ;;  %v1094_v7 = vld [vmem:[#allocation16 + $0x8] sm:$0xff] }
 0x44f   :  { %v737_v11 = vadd.f32 %v736_v3, %v731_v8  ;;  %v917_v3 = vld [vmem:[#allocation8] sm:$0xff] }
 0x450   :  { %v740_v23 = vmax.f32 %v738_v9, 0.0  ;;  %v1095_v8 = vld [vmem:[#allocation16 + $0x10] sm:$0xff] }
 0x451   :  { %v739_v20 = vmax.f32 %v737_v11, 0.0  ;;  %v1096_v11 = vld [vmem:[#allocation16 + $0x18] sm:$0xff] }
 0x452   :  { %v2299_v13 = vpack.c.bf16 %v1096_v11, %v1095_v8 }
 0x453   :  { %1802 = vmatprep.mubr.f32.mxu0 %v739_v20 }
 0x454   :  { %1803 = vmatmul.mubr.f32.vlgmr.msra.gmra.mrb[4].mxu0 %v740_v23 }
 0x455   :  { %2202 = vmatpush3.bf16.msra.mxu0 %v2199_v48  ;;  %1837 = vmatprep.mubr.f32.mxu0 %v455_v26  ;;  %v472_v48 = vld [vmem:[#allocation13 + $0x78] sm:$0xff] }
 0x456   :  { %2204 = vmatprep.subr.bf16.mxu0 %v2203_v24  ;;  %v2227_v49 = vpack.c.bf16 %v472_v48, %v471_v47 }
 0x457   :  { %v2413_v42 = vpop.eup %2412 }
 0x458   :  { %v442_v46 = vmul.f32 %v2413_v42, %v3017_v56  ;;  %v1106_v42 = vld [vmem:[#allocation16 + $0x68] sm:$0xff] }
 0x459   :  { %2206 = vmatpush3.bf16.msra.mxu0 %v2203_v24 }
 0x45a   :  { %2208 = vmatprep.subr.bf16.mxu0 %v2207_v29  ;;  %v448_v50 = vmul.f32 %v446_v62, %v442_v46 }
 0x45c   :  { %v454_v51 = vadd.f32 %v452_v58, %v448_v50  ;;  %v1093_v58 = vld [vmem:[#allocation16] sm:$0xff] }
 0x45d   :  { %2210 = vmatpush3.bf16.msra.mxu0 %v2207_v29  ;;  %v2295_v9 = vpack.c.bf16 %v1094_v7, %v1093_v58  ;;  %v1099_v29 = vld [vmem:[#allocation16 + $0x30] sm:$0xff] }
 0x45e   :  { %2212 = vmatprep.subr.bf16.mxu0 %v2211_v33  ;;  %v456_v52 = vmax.f32 %v454_v51, 0.0  ;;  %v2307_v32 = vpack.c.bf16 %v1100_v30, %v1099_v29  ;;  %v1081_v51 = vsub.s32 7, %v2987_v36 }
 0x460   :  { %v1082_v53 = vrot.slane %v2993_v38, %v1081_v51 }
 0x461   :  { %2214 = vmatpush3.bf16.msra.mxu0 %v2211_v33  ;;  %v1101_v33 = vld [vmem:[#allocation16 + $0x40] sm:$0xff] }
 0x462   :  { %2216 = vmatprep.subr.bf16.mxu0 %v2215_v39 }
 0x465   :  { %2218 = vmatpush3.bf16.msra.mxu0 %v2215_v39  ;;  %v2311_v39 = vpack.c.bf16 %v1102_v34, %v1101_v33 }
 0x466   :  { %2220 = vmatprep.subr.bf16.mxu0 %v2219_v14 }
 0x469   :  { %2222 = vmatpush3.bf16.msra.mxu0 %v2219_v14  ;;  %v1105_v14 = vld [vmem:[#allocation16 + $0x60] sm:$0xff] }
 0x46a   :  { %2224 = vmatprep.subr.bf16.mxu0 %v2223_v45  ;;  %v2319_v43 = vpack.c.bf16 %v1106_v42, %v1105_v14 }
 0x46d   :  { %2226 = vmatpush3.bf16.msra.mxu0 %v2223_v45  ;;  %v1108_v45 = vld [vmem:[#allocation16 + $0x78] sm:$0xff] }
 0x46e   :  { %2228 = vmatprep.subr.bf16.mxu0 %v2227_v49  ;;  %v2323_v46 = vpack.c.bf16 %v1108_v45, %v1107_v44 }
 0x471   :  { %2230 = vmatpush3.bf16.msra.mxu0 %v2227_v49 }
 0x472   :  { %2296 = vmatprep.subr.bf16.mxu0 %v2295_v9 }
 0x474   :  { %1838 = vmatmul.mubr.f32.vlgmr.msra.gmra.mrb[4].mxu0 %v456_v52  ;;  %v176_v52 = vld [vmem:[%s3184_s10 + $0x8] sm:$0xf]  ;;  %s2690_s10 = smov [#allocation19]  }
 0x475   :  { %2298 = vmatpush3.bf16.msra.mxu0 %v2295_v9  ;;  %s1365_s16 = sshll.u32 %s2690_s10, 4  ;;  %s1366_s16 = int_to_ptr.vmem [resolvable:$true] %s1365_s16 }
 0x476   :  { %2300 = vmatprep.subr.bf16.mxu0 %v2299_v13  ;;  %s2642_s17 = scalar_lea.vmem %s1366_s16, 256  ;;  %p2647_p11 = scmp.lt.s32.totalorder %s1366_s16, %s1366_s16 }
 0x477   :  { %p2643_p10 = scmp.ne.s32.totalorder %s1366_s16, %s2642_s17  ;;  %p2648_p12 = scmp.lt.s32.totalorder %s2642_s17, %s2642_s17 }
 0x479   :  { %2302 = vmatpush3.bf16.msra.mxu0 %v2299_v13  ;;  %v1355_v13 = vrot.slane %v176_v52, %v485_v61  ;;  %p2649_p13 = por %p2648_p12, %p2647_p11 }
 0x47a   :  { %2304 = vmatprep.subr.bf16.mxu0 %v2303_v21 }
 0x47b   :  { %p2650_p0 = pnand %p2649_p13, %p2643_p10 }
 0x47d   :  { %2306 = vmatpush3.bf16.msra.mxu0 %v2303_v21 }
 0x47e   :  { %2308 = vmatprep.subr.bf16.mxu0 %v2307_v32 }
 0x481   :  { %2310 = vmatpush3.bf16.msra.mxu0 %v2307_v32 }
 0x482   :  { %2312 = vmatprep.subr.bf16.mxu0 %v2311_v39 }
 0x485   :  { %2314 = vmatpush3.bf16.msra.mxu0 %v2311_v39 }
 0x486   :  { %2316 = vmatprep.subr.bf16.mxu0 %v2315_v41 }
 0x489   :  { %2318 = vmatpush3.bf16.msra.mxu0 %v2315_v41 }
 0x48a   :  { %2320 = vmatprep.subr.bf16.mxu0 %v2319_v43 }
 0x48d   :  { %2322 = vmatpush3.bf16.msra.mxu0 %v2319_v43 }
 0x48e   :  { %2324 = vmatprep.subr.bf16.mxu0 %v2323_v46 }
 0x491   :  { %2326 = vmatpush3.bf16.msra.mxu0 %v2323_v46 }
 0x492   :  { %2360 = vmatprep.subr.bf16.mxu0 %v2937_v10 }
 0x547   :  { %v1839_v57 = vpop.f32.mrb[4].mxu0 }
 0x548   :  { %v912_v60 = vadd.f32 %v1839_v57, %v910_v55  ;;  %v898_v56 = vpop.f32.mrb[5].mxu0 }
 0x549   :  { %v911_v1 = vadd.f32 %v910_v55, %v898_v56 }
 0x54a   :  { %v916_v2 = vadd.f32 %v914_v59, %v912_v60  ;;  %v1088_v59 = vrot.slane %v176_v52, %v201_v37 }
 0x54b   :  { %v915_v62 = vadd.f32 %v913_v0, %v911_v1 }
 0x54c   :  { %v920_v6 = vadd.f32 %v918_v4, %v916_v2 }
 0x54d   :  { %v919_v5 = vadd.f32 %v917_v3, %v915_v62 }
 0x54f   :  { %1872 = vmatprep.mubr.f32.mxu1 %v919_v5 }
 0x550   :  { %1873 = vmatmul.mubr.f32.vlgmr.msra.gmra.mrb[8].mxu1 %v920_v6 }
 0x551   :  { %2266 = vmatpush3.bf16.msra.mxu1 %v2937_v10 }
 0x552   :  { %2268 = vmatprep.subr.bf16.mxu1 %v2939_v12 }
 0x555   :  { %2270 = vmatpush3.bf16.msra.mxu1 %v2939_v12 }
 0x556   :  { %2272 = vmatprep.subr.bf16.mxu1 %v2945_v16 }
 0x559   :  { %2274 = vmatpush3.bf16.msra.mxu1 %v2945_v16 }
 0x55a   :  { %2276 = vmatprep.subr.bf16.mxu1 %v2952_v19 }
 0x55d   :  { %2278 = vmatpush3.bf16.msra.mxu1 %v2952_v19 }
 0x55e   :  { %2280 = vmatprep.subr.bf16.mxu1 %v2958_v22 }
 0x561   :  { %2282 = vmatpush3.bf16.msra.mxu1 %v2958_v22 }
 0x562   :  { %2284 = vmatprep.subr.bf16.mxu1 %v2964_v25 }
 0x565   :  { %2286 = vmatpush3.bf16.msra.mxu1 %v2964_v25 }
 0x566   :  { %2288 = vmatprep.subr.bf16.mxu1 %v2970_v28 }
 0x569   :  { %2290 = vmatpush3.bf16.msra.mxu1 %v2970_v28 }
 0x56a   :  { %2292 = vmatprep.subr.bf16.mxu1 %v2980_v31 }
 0x56d   :  { %2294 = vmatpush3.bf16.msra.mxu1 %v2980_v31 }
 0x56e   :  { %2328 = vmatprep.subr.bf16.mxu1 %v2937_v10 }
 0x623   :  { %v1874_v15 = vpop.f32.mrb[8].mxu1 }
 0x624   :  { %v3105_v17 = vsub.f32 %v920_v6, %v1874_v15  ;;  %v987_v20 = vpop.f32.mrb[9].mxu1 }
 0x625   :  { %v3107_v23 = vsub.f32 %v919_v5, %v987_v20 }
 0x626   :  { %v999_v26 = vmul.f32 %v3105_v17, %v3105_v17 }
 0x627   :  { %v998_v24 = vmul.f32 %v3107_v23, %v3107_v23 }
 0x629   :  { %1907 = vmatprep.mubr.f32.mxu1 %v998_v24 }
 0x62a   :  { %1908 = vmatmul.mubr.f32.vlgmr.msra.gmra.mrb[10].mxu1 %v999_v26 }
 0x62b   :  { %2330 = vmatpush3.bf16.msra.mxu1 %v2937_v10 }
 0x62c   :  { %2332 = vmatprep.subr.bf16.mxu1 %v2939_v12 }
 0x62f   :  { %2334 = vmatpush3.bf16.msra.mxu1 %v2939_v12 }
 0x630   :  { %2336 = vmatprep.subr.bf16.mxu1 %v2945_v16 }
 0x633   :  { %2338 = vmatpush3.bf16.msra.mxu1 %v2945_v16 }
 0x634   :  { %2340 = vmatprep.subr.bf16.mxu1 %v2952_v19 }
 0x637   :  { %2342 = vmatpush3.bf16.msra.mxu1 %v2952_v19 }
 0x638   :  { %2344 = vmatprep.subr.bf16.mxu1 %v2958_v22 }
 0x63b   :  { %2346 = vmatpush3.bf16.msra.mxu1 %v2958_v22 }
 0x63c   :  { %2348 = vmatprep.subr.bf16.mxu1 %v2964_v25 }
 0x63f   :  { %2350 = vmatpush3.bf16.msra.mxu1 %v2964_v25 }
 0x640   :  { %2352 = vmatprep.subr.bf16.mxu1 %v2970_v28 }
 0x643   :  { %2354 = vmatpush3.bf16.msra.mxu1 %v2970_v28 }
 0x644   :  { %2356 = vmatprep.subr.bf16.mxu1 %v2980_v31 }
 0x647   :  { %2358 = vmatpush3.bf16.msra.mxu1 %v2980_v31 }
 0x6fd   :  { %v1909_v47 = vpop.f32.mrb[10].mxu1 }
 0x6fe   :  { %v1072_v48 = vadd.f32 1e-05, %v1909_v47  ;;  %v1066_v49 = vpop.f32.mrb[11].mxu1 }
 0x6ff   :  { %v1067_v50 = vadd.f32 1e-05, %v1066_v49 }
 0x700   :  { %2414 = vrsqrt.f32 %v1072_v48 }
 0x701   :  { %2416 = vrsqrt.f32 %v1067_v50 }
 0x70a   :  { %v2415_v55 = vpop.eup %2414 }
 0x70b   :  { %v2417_v57 = vpop.eup %2416  ;;  %v1078_v60 = vmul.f32 %v2415_v55, %v3105_v17 }
 0x70c   :  { %v1077_v56 = vmul.f32 %v2417_v57, %v3107_v23 }
 0x70d   :  { %v1084_v0 = vmul.f32 %v1082_v53, %v1078_v60 }
 0x70e   :  { %v1083_v1 = vmul.f32 %v1082_v53, %v1077_v56 }
 0x70f   :  { %v1090_v2 = vadd.f32 %v1088_v59, %v1084_v0 }
 0x710   :  { %v1089_v3 = vadd.f32 %v1088_v59, %v1083_v1 }
 0x711   :  { %v1092_v62 = vmax.f32 %v1090_v2, 0.0 }
 0x712   :  { %v1091_v4 = vmax.f32 %v1089_v3, 0.0 }
 0x714   :  { %1942 = vmatprep.mubr.f32.mxu0 %v1091_v4 }
 0x715   :  { %1943 = vmatmul.mubr.f32.vlgmr.msra.gmra.mrb[6].mxu0 %v1092_v62 }
 0x716   :  { %2362 = vmatpush3.bf16.msra.mxu0 %v2937_v10  ;;  %v1112_v10 = vrot.slane %v176_v52, %v445_v54  ;;  %v1349_v54 = vrot.slane %v176_v52, %v451_v63 }
 0x717   :  { %2364 = vmatprep.subr.bf16.mxu0 %v2939_v12 }
 0x71a   :  { %2366 = vmatpush3.bf16.msra.mxu0 %v2939_v12 }
 0x71b   :  { %2368 = vmatprep.subr.bf16.mxu0 %v2945_v16 }
 0x71e   :  { %2370 = vmatpush3.bf16.msra.mxu0 %v2945_v16 }
 0x71f   :  { %2372 = vmatprep.subr.bf16.mxu0 %v2952_v19 }
 0x722   :  { %2374 = vmatpush3.bf16.msra.mxu0 %v2952_v19 }
 0x723   :  { %2376 = vmatprep.subr.bf16.mxu0 %v2958_v22 }
 0x726   :  { %2378 = vmatpush3.bf16.msra.mxu0 %v2958_v22 }
 0x727   :  { %2380 = vmatprep.subr.bf16.mxu0 %v2964_v25 }
 0x72a   :  { %2382 = vmatpush3.bf16.msra.mxu0 %v2964_v25 }
 0x72b   :  { %2384 = vmatprep.subr.bf16.mxu0 %v2970_v28 }
 0x72e   :  { %2386 = vmatpush3.bf16.msra.mxu0 %v2970_v28 }
 0x72f   :  { %2388 = vmatprep.subr.bf16.mxu0 %v2980_v31 }
 0x732   :  { %2390 = vmatpush3.bf16.msra.mxu0 %v2980_v31 }
 0x7e8   :  { %v1944_v12 = vpop.f32.mrb[6].mxu0 }
 0x7e9   :  { %v1179_v16 = vpop.f32.mrb[7].mxu0  ;;  %v1185_v37 = vadd.f32 %v1944_v12, %v1112_v10 }
 0x7ea   :  { %v1180_v19 = vadd.f32 %v1179_v16, %v1112_v10 }
 0x7ec   :  { %1977 = vmatprep.mubr.f32.mxu1 %v1180_v19 }
 0x7ed   :  { %1978 = vmatmul.mubr.f32.vlgmr.msra.gmra.mrb[12].mxu1 %v1185_v37 }
 0x8c0   :  { %v1979_v22 = vpop.f32.mrb[12].mxu1 }
 0x8c1   :  { %v1264_v38 = vsub.f32 %v1185_v37, %v1979_v22  ;;  %v1254_v25 = vpop.f32.mrb[13].mxu1 }
 0x8c2   :  { %v1263_v5 = vsub.f32 %v1180_v19, %v1254_v25 }
 0x8c3   :  { %v1266_v58 = vmul.f32 %v1264_v38, %v1264_v38 }
 0x8c4   :  { %v1265_v6 = vmul.f32 %v1263_v5, %v1263_v5 }
 0x8c6   :  { %2012 = vmatprep.mubr.f32.mxu0 %v1265_v6 }
 0x8c7   :  { %2013 = vmatmul.mubr.f32.vlgmr.msra.gmra.mrb[8].mxu0 %v1266_v58 }
 0x99a   :  { %v2014_v28 = vpop.f32.mrb[8].mxu0 }
 0x99b   :  { %v1339_v7 = vadd.f32 1e-05, %v2014_v28  ;;  %v1333_v31 = vpop.f32.mrb[9].mxu0 }
 0x99c   :  { %v1334_v8 = vadd.f32 1e-05, %v1333_v31 }
 0x99d   :  { %2418 = vrsqrt.f32 %v1339_v7 }
 0x99e   :  { %2420 = vrsqrt.f32 %v1334_v8 }
 0x9a7   :  { %v2419_v9 = vpop.eup %2418 }
 0x9a8   :  { %v2421_v11 = vpop.eup %2420  ;;  %v1345_v15 = vmul.f32 %v2419_v9, %v1264_v38 }
 0x9a9   :  { %v1344_v17 = vmul.f32 %v2421_v11, %v1263_v5 }
 0x9aa   :  { %v1351_v20 = vmul.f32 %v1349_v54, %v1345_v15 }
 0x9ab   :  { %v1350_v23 = vmul.f32 %v1349_v54, %v1344_v17 }
 0x9ac   :  { %v1357_v24 = vadd.f32 %v1355_v13, %v1351_v20 }
 0x9ad   :  { %v1356_v26 = vadd.f32 %v1355_v13, %v1350_v23 }
 0x9ae   :  { %1359 = vst [vmem:[#allocation19 + $0x8] sm:$0xff] %v1357_v24 }
 0x9af   :  { %1358 = vst [vmem:[#allocation19] sm:$0xff] %v1356_v26 }
 0x9b0   :  { %2653 = shalt.err (!%p2650_p0)
}
 0x9b1   :  { %s2654_s21 = scalar_lea.hbm %s3185_s11, 256 }
 0x9b2   :  { %p2655_p1 = scmp.ne.s32.totalorder %s3185_s11, %s2654_s21  ;;  %p2658_p2 = scmp.lt.u32.totalorder %s2654_s21, %s3185_s11 }
 0x9b4   :  { %p2660_p3 = pnand %p2658_p2, %p2655_p1 }
 0x9b6   :  { %2663 = shalt.err (!%p2660_p3)
}
 0x9b7   :  { %1371 = dma.vmem_to_hbm [thread:$0]  %s1366_s16, 256, %s3185_s11, [#allocation4], %s2680_s29, %s2680_s29, %s2681_s30  }
 0x9b8   :  { %2676 = dma.done.wait [#allocation4], 256  }
 0x9b9   :  { %2677 = vsyncadd [#allocation4], 4294967040 }
 0x9ba   :  { %1375 = vsyncpa [#allocation3], 1 }
 0x9bb   :  { %1376 = vsyncpa [#allocation6], 1 }
 0x9bc   :  { %1377 = vsyncpa [#allocation9], 1 }
 0x9bd   :  { %1378 = vsyncpa [#allocation12], 1 }
 0x9be   :  { %1379 = vsyncpa [#allocation15], 1 }
 0x9bf   :  { %1380 = vsyncpa [#allocation18], 1 }
 0x9c0   :  { %1381 = vsyncpa [#allocation4], 1 }

</bundles_post_ra>
